<compile_context>
chip_gen: v5e
topology: v5e:2x2
jax: 0.10.0
libtpu: 0.0.40
codegen_flags: <defaults>
</compile_context>

<pallas_src>
import functools

import numpy as np
import jax
import jax.numpy as jnp
from jax.experimental import pallas as pl
from jax.experimental.pallas import tpu as pltpu


# --------------------------- model configuration ----------------------------
N_BODIES = 8            # skeleton bodies / joints (incl. root)   (PREDICTION.BODY)
N_COORDS = N_BODIES - 1 # generalized coordinates (one hinge / non-root joint)
N_MARKERS = 12          # PREDICTION.MARKER
ROT_DIM = 6             # 6D root-rotation representation
TRANS_DIM = 3
# opensimTransitionLayer.outputSize
OUT_SIZE = ROT_DIM + TRANS_DIM + 3 * N_BODIES + N_COORDS        # = 40
OUT_PAD = 128           # lane-dense padding of the last conv's output channels

CONV_LAYER = 2                      # cfg.MODEL.CONV_LAYER
CONV_CHANNEL_SIZE = (256, 128)      # cfg.MODEL.CONV_CHANNEL_SIZE
BACKBONE_CHANNELS = CONV_CHANNEL_SIZE[0]
S2D = 8                             # space-to-depth factor of the stand-in backbone
BN_EPS = 1e-5
MAX_SPATIAL_TILE = 1024             # rows per grid step (sized for v7x 64 MiB VMEM)

# skeleton topology (pyBaseModel stand-in, deterministic constants)
PARENTS = (-1, 0, 1, 2, 0, 4, 0, 6)
AXES = np.array([[1, 0, 0], [0, 1, 0], [0, 0, 1],
                 [1, 0, 0], [0, 1, 0], [0, 0, 1], [1, 0, 0]], np.float32)
OFFSETS = np.array([[0.0, 0.0, 0.0], [0.0, -0.4, 0.0], [0.0, -0.4, 0.0],
                    [0.0, -0.4, 0.0], [0.2, 0.0, 0.0], [0.2, 0.0, 0.0],
                    [-0.2, 0.0, 0.0], [-0.2, 0.0, 0.0]], np.float32)


# ------------------------------ Pallas kernel --------------------------------
def _fused_stack_pool_kernel(x_ref, w0_ref, s0_ref, w1_ref, s1_ref,
                             w2_ref, s2_ref, o_ref, *, inv_hw):
    """Fused: backbone projection -> conv0+BN+ReLU -> conv1+BN -> spatial sum.

    x_ref : (tile_m, Cin0) bf16 patch rows for one batch sample / spatial tile.
    w*_ref: VMEM-resident bf16 weights (BN scale folded into columns).
    s*_ref: (1, C) f32 folded bias+BN shifts.
    o_ref : (1, OUT_PAD) f32 resident pooled accumulator for this sample.
    """
    s = pl.program_id(1)

    @pl.when(s == 0)
    def _():
        o_ref[...] = jnp.zeros_like(o_ref)

    # layer 0: stand-in backbone pointwise projection + bias + ReLU
    h = jnp.dot(x_ref[...], w0_ref[...], preferred_element_type=jnp.float32)
    h = jnp.maximum(h + s0_ref[...], 0.0)
    # layer 1: 1x1 conv (BN scale folded) + shift + ReLU
    h = jnp.dot(h.astype(w1_ref.dtype), w1_ref[...],
                preferred_element_type=jnp.float32)
    h = jnp.maximum(h + s1_ref[...], 0.0)
    # layer 2 (last): 1x1 conv (BN folded), NO ReLU (matches the PyTorch loop)
    h = jnp.dot(h.astype(w2_ref.dtype), w2_ref[...],
                preferred_element_type=jnp.float32)
    h = h + s2_ref[...]

    # global-average-pool accumulation over the spatial (reduction) axis
    o_ref[...] += jnp.sum(h, axis=0, keepdims=True)

    @pl.when(s == pl.num_programs(1) - 1)
    def _():
        o_ref[...] = o_ref[...] * inv_hw


def _choose_spatial_tile(hw, max_tile=MAX_SPATIAL_TILE):
    """Largest (8,128)-friendly tile that divides hw; whole dim if hw is small."""
    if hw <= max_tile:
        return hw
    for t in range(max_tile - max_tile % 8, 7, -8):
        if hw % t == 0:
            return t
    return hw  # fall back to a whole-dim block (still valid, just less pipelined)


def fused_stack_and_pool(patches, w0, s0, w1, s1, w2, s2):
    """patches: (N, HW, Cin0) bf16 -> pooled (N, OUT_PAD) f32."""
    N, HW, Cin0 = patches.shape
    C1 = w0.shape[1]
    C2 = w1.shape[1]
    C3 = w2.shape[1]
    tile_m = _choose_spatial_tile(HW)
    assert HW % tile_m == 0
    num_tiles = HW // tile_m

    kernel = functools.partial(_fused_stack_pool_kernel, inv_hw=1.0 / HW)
    out = pl.pallas_call(
        kernel,
        out_shape=jax.ShapeDtypeStruct((N, 1, C3), jnp.float32),
        grid=(N, num_tiles),
        in_specs=[
            # streamed activations: one (tile_m, Cin0) slab per grid step
            pl.BlockSpec((None, tile_m, Cin0), lambda n, s: (n, s, 0)),
            # VMEM-resident weights / shifts (same block every grid step)
            pl.BlockSpec((Cin0, C1), lambda n, s: (0, 0)),
            pl.BlockSpec((1, C1), lambda n, s: (0, 0)),
            pl.BlockSpec((C1, C2), lambda n, s: (0, 0)),
            pl.BlockSpec((1, C2), lambda n, s: (0, 0)),
            pl.BlockSpec((C2, C3), lambda n, s: (0, 0)),
            pl.BlockSpec((1, C3), lambda n, s: (0, 0)),
        ],
        out_specs=pl.BlockSpec((None, 1, C3), lambda n, s: (n, 0, 0)),
        compiler_params=pltpu.CompilerParams(
            dimension_semantics=("parallel", "arbitrary"),
            vmem_limit_bytes=32 * 1024 * 1024),
    )(patches, w0, s0, w1, s1, w2, s2)
    return out.reshape(N, C3)


# ------------------------------- parameters ----------------------------------
def init_params(key):
    ks = jax.random.split(key, 8)
    params = {}

    # stand-in ResNet101 head: space-to-depth patches -> pointwise projection
    cin0 = 3 * S2D * S2D
    w0 = 0.05 * jax.random.normal(ks[0], (cin0, BACKBONE_CHANNELS), jnp.float32)
    b0 = 0.01 * jax.random.normal(ks[1], (BACKBONE_CHANNELS,), jnp.float32)
    params["w0"] = w0.astype(jnp.bfloat16)
    params["shift0"] = b0[None, :]                        # f32

    # conv_resnet101_opensim: 1x1 convs + eval-mode BatchNorm, folded:
    #   y = x @ (w * scale) + (beta + (b - mean) * scale),  scale = gamma/sqrt(var+eps)
    cins = [CONV_CHANNEL_SIZE[0], CONV_CHANNEL_SIZE[1]]
    couts = [CONV_CHANNEL_SIZE[1], OUT_SIZE]
    ws, shifts = [], []
    for i in range(CONV_LAYER):
        cin, cout = cins[i], couts[i]
        kw, kb, kg, kbt, km, kv = jax.random.split(ks[2 + i], 6)
        w = (1.0 / np.sqrt(cin)) * jax.random.normal(kw, (cin, cout), jnp.float32)
        b = 0.01 * jax.random.normal(kb, (cout,), jnp.float32)
        gamma = 1.0 + 0.1 * jax.random.normal(kg, (cout,), jnp.float32)
        beta = 0.05 * jax.random.normal(kbt, (cout,), jnp.float32)
        mean = 0.05 * jax.random.normal(km, (cout,), jnp.float32)
        var = 1.0 + 0.1 * jax.random.uniform(kv, (cout,), jnp.float32)
        scale = gamma / jnp.sqrt(var + BN_EPS)
        ws.append(w * scale[None, :])                     # BN scale -> weight columns
        shifts.append(beta + (b - mean) * scale)          # folded conv bias + BN shift

    params["w1"] = ws[0].astype(jnp.bfloat16)
    params["shift1"] = shifts[0][None, :]
    # pad the last layer's 40 output channels to 128 for lane-dense MXU/stores
    w2 = jnp.zeros((CONV_CHANNEL_SIZE[1], OUT_PAD), jnp.float32).at[:, :OUT_SIZE].set(ws[1])
    s2 = jnp.zeros((OUT_PAD,), jnp.float32).at[:OUT_SIZE].set(shifts[1])
    params["w2"] = w2.astype(jnp.bfloat16)
    params["shift2"] = s2[None, :]

    # coordinateValueRange / bodyScaleValueRange (mid, half-range)
    params["coord_mid"] = jnp.zeros((N_COORDS,), jnp.float32)
    params["coord_half"] = (0.5 * np.pi) * jnp.ones((N_COORDS,), jnp.float32)
    params["scale_mid"] = jnp.float32(1.0)
    params["scale_half"] = jnp.float32(0.25)

    # marker regression weights (markers as convex combinations of joints)
    mw = jax.random.uniform(ks[5], (N_MARKERS, N_BODIES), jnp.float32)
    params["marker_w"] = mw / jnp.sum(mw, axis=1, keepdims=True)
    return params


# --------------------------- kinematics helpers (glue) ------------------------
def _rot6d_to_matrix(x6):
    a1, a2 = x6[..., :3], x6[..., 3:6]
    b1 = a1 / (jnp.linalg.norm(a1, axis=-1, keepdims=True) + 1e-8)
    a2p = a2 - jnp.sum(b1 * a2, axis=-1, keepdims=True) * b1
    b2 = a2p / (jnp.linalg.norm(a2p, axis=-1, keepdims=True) + 1e-8)
    b3 = jnp.cross(b1, b2)
    # rows (axis=-2), matching pytorch3d's rotation_6d_to_matrix convention
    return jnp.stack([b1, b2, b3], axis=-2)               # (N, 3, 3)


def _axis_angle_to_matrix(axis_np, angle):
    # axis_np: static numpy (3,), angle: (N,)
    x, y, z = float(axis_np[0]), float(axis_np[1]), float(axis_np[2])
    K = jnp.array([[0.0, -z, y], [z, 0.0, -x], [-y, x, 0.0]], jnp.float32)
    c = jnp.cos(angle)[:, None, None]
    s = jnp.sin(angle)[:, None, None]
    I = jnp.eye(3, dtype=jnp.float32)
    return I[None] + s * K[None] + (1.0 - c) * (K @ K)[None]


def _forward_kinematics(root_rot, root_trans, bone_scale, angles):
    Rs = [None] * N_BODIES
    ts = [None] * N_BODIES
    Rs[0], ts[0] = root_rot, root_trans
    for j in range(1, N_BODIES):
        p = PARENTS[j]
        Rl = _axis_angle_to_matrix(AXES[j - 1], angles[:, j - 1])
        Rs[j] = jnp.einsum("nij,njk->nik", Rs[p], Rl)
        off = jnp.asarray(OFFSETS[j])[None, :] * bone_scale[:, j, :]
        ts[j] = ts[p] + jnp.einsum("nij,nj->ni", Rs[p], off)
    return jnp.stack(ts, axis=1)                          # (N, N_BODIES, 3)


# --------------------------------- forward ------------------------------------
def opensim_model_forward(params, x, other_body_prediction=None):
    N, C, H, W = x.shape

    # ---- self.resnet101Layer(x) ----
    # TODO(synk): full ResNet101 backbone source is not part of this module;
    # replaced by a space-to-depth + pointwise projection + ReLU (that projection
    # is the first matmul of the fused kernel).  The rearrangement below stays
    # inside the same jit so XLA fuses it with the copy into the kernel layout.
    assert H % S2D == 0 and W % S2D == 0
    h, w = H // S2D, W // S2D
    hw = h * w
    patches = x.reshape(N, C, h, S2D, w, S2D)
    patches = jnp.transpose(patches, (0, 2, 4, 1, 3, 5))
    patches = patches.reshape(N, hw, C * S2D * S2D).astype(jnp.bfloat16)

    # ---- fused: backbone proj -> conv/BN/ReLU stack -> global average pool ----
    pooled = fused_stack_and_pool(
        patches,
        params["w0"], params["shift0"],
        params["w1"], params["shift1"],
        params["w2"], params["shift2"])                   # (N, OUT_PAD) f32
    pooled = pooled[:, :OUT_SIZE]                         # drop zero padding

    # ---- self.opensimTransitionLayer(x) ----
    # TODO(synk): OpenSimTransitionLayer source not provided; standard
    # global-average-pool (fused above) + tanh range mapping is used.
    rot6 = pooled[:, :ROT_DIM]
    trans = pooled[:, ROT_DIM:ROT_DIM + TRANS_DIM]
    scale_raw = pooled[:, ROT_DIM + TRANS_DIM:ROT_DIM + TRANS_DIM + 3 * N_BODIES]
    angle_raw = pooled[:, ROT_DIM + TRANS_DIM + 3 * N_BODIES:]

    pred_rot = _rot6d_to_matrix(rot6)                                            # (N, 3, 3)
    pred_trans = trans                                                           # (N, 3)
    pred_bone_scale = params["scale_mid"] + jnp.tanh(scale_raw).reshape(N, N_BODIES, 3) * params["scale_half"]
    pred_angle = params["coord_mid"][None, :] + jnp.tanh(angle_raw) * params["coord_half"][None, :]

    if other_body_prediction is not None:                # x['predBoneScale'] = otherBodyPrediction
        pred_bone_scale = other_body_prediction

    # ---- self.opensimTreeLayer(x) ----
    # TODO(synk): OpenSimTreeLayer source not provided; simplified deterministic
    # forward kinematics over a fixed 8-body tree (plain JAX glue).
    joints = _forward_kinematics(pred_rot, pred_trans, pred_bone_scale, pred_angle)
    markers = jnp.einsum("mj,njd->nmd", params["marker_w"], joints)

    return {
        "predRot": pred_rot,
        "predTrans": pred_trans,
        "predBoneScale": pred_bone_scale,
        "predAngle": pred_angle,
        "predJointPos": joints,
        "predMarkerPos": markers,
    }


# ----------------------------------- main --------------------------------------
if __name__ == "__main__":
    root_key = jax.random.PRNGKey(0)
    pkey, xkey = jax.random.split(root_key)

    params = init_params(pkey)
    x = jax.random.normal(xkey, (2, 3, 16, 16), jnp.float32)     # small NCHW image

    fwd = jax.jit(opensim_model_forward)
    out = fwd(params, x)
    out = jax.block_until_ready(out)

    assert out["predRot"].shape == (2, 3, 3)
    assert out["predTrans"].shape == (2, 3)
    assert out["predBoneScale"].shape == (2, N_BODIES, 3)
    assert out["predAngle"].shape == (2, N_COORDS)
    assert out["predJointPos"].shape == (2, N_BODIES, 3)
    assert out["predMarkerPos"].shape == (2, N_MARKERS, 3)
    assert bool(jnp.all(jnp.isfinite(out["predMarkerPos"])))
    print("KERNEL_OK")
</pallas_src>

<mosaic_0001>
module attributes {stable_mosaic.version = 11 : i64} {
  func.func @_fused_stack_pool_kernel(%arg0: i32, %arg1: i32, %arg2: memref<1x4x192xbf16, #tpu.memory_space<vmem>>, %arg3: memref<192x256xbf16, #tpu.memory_space<vmem>>, %arg4: memref<1x256xf32, #tpu.memory_space<vmem>>, %arg5: memref<256x128xbf16, #tpu.memory_space<vmem>>, %arg6: memref<1x128xf32, #tpu.memory_space<vmem>>, %arg7: memref<128x128xbf16, #tpu.memory_space<vmem>>, %arg8: memref<1x128xf32, #tpu.memory_space<vmem>>, %arg9: memref<1x1x128xf32, #tpu.memory_space<vmem>>) attributes {dimension_semantics = [#tpu.dimension_semantics<parallel>, #tpu.dimension_semantics<arbitrary>], iteration_bounds = array<i64: 2, 1>, scalar_prefetch = 0 : i64, scratch_operands = 0 : i64, tpu.core_type = #tpu.core_type<tc>, window_params = [{transform_indices = @transform_0, window_bounds = array<i64: 1, 4, 192>}, {pipeline_mode = #tpu.pipeline_mode<synchronous>, transform_indices = @transform_1, window_bounds = array<i64: 192, 256>}, {pipeline_mode = #tpu.pipeline_mode<synchronous>, transform_indices = @transform_2, window_bounds = array<i64: 1, 256>}, {pipeline_mode = #tpu.pipeline_mode<synchronous>, transform_indices = @transform_3, window_bounds = array<i64: 256, 128>}, {pipeline_mode = #tpu.pipeline_mode<synchronous>, transform_indices = @transform_4, window_bounds = array<i64: 1, 128>}, {pipeline_mode = #tpu.pipeline_mode<synchronous>, transform_indices = @transform_5, window_bounds = array<i64: 128, 128>}, {pipeline_mode = #tpu.pipeline_mode<synchronous>, transform_indices = @transform_6, window_bounds = array<i64: 1, 128>}, {transform_indices = @transform_7, window_bounds = array<i64: 1, 1, 128>}]} {
    %c0_i32 = arith.constant 0 : i32
    %0 = arith.cmpi eq, %arg1, %c0_i32 : i32
    %1 = arith.extui %0 : i1 to i32
    %c0_i32_0 = arith.constant 0 : i32
    %2 = arith.cmpi ne, %1, %c0_i32_0 : i32
    scf.if %2 {
      %cst_28 = arith.constant 0.000000e+00 : f32
      %37 = vector.broadcast %cst_28 : f32 to vector<1x128xf32>
      %c0_29 = arith.constant 0 : index
      %c0_30 = arith.constant 0 : index
      %c0_31 = arith.constant 0 : index
      %38 = vector.load %arg9[%c0_29, %c0_30, %c0_31] : memref<1x1x128xf32, #tpu.memory_space<vmem>>, vector<1x1x128xf32>
      %39 = vector.shape_cast %38 : vector<1x1x128xf32> to vector<1x128xf32>
      %40 = vector.shape_cast %37 : vector<1x128xf32> to vector<1x1x128xf32>
      tpu.vector_store %arg9[%c0_29, %c0_30, %c0_31], %40 {strides = array<i32>} : memref<1x1x128xf32, #tpu.memory_space<vmem>>, vector<1x1x128xf32>,
    } else {
    }
    %c0 = arith.constant 0 : index
    %c0_1 = arith.constant 0 : index
    %c0_2 = arith.constant 0 : index
    %3 = vector.load %arg2[%c0, %c0_1, %c0_2] : memref<1x4x192xbf16, #tpu.memory_space<vmem>>, vector<1x4x192xbf16>
    %4 = vector.shape_cast %3 : vector<1x4x192xbf16> to vector<4x192xbf16>
    %c0_3 = arith.constant 0 : index
    %c0_4 = arith.constant 0 : index
    %5 = vector.load %arg3[%c0_3, %c0_4] : memref<192x256xbf16, #tpu.memory_space<vmem>>, vector<192x256xbf16>
    %cst = arith.constant dense<0.000000e+00> : vector<4x256xf32>
    %6 = tpu.matmul %4, %5, %cst {dimension_numbers = #tpu.dot_dimension_numbers<[1], [0], [0], [1], [0, 0, 1, 1], [], []>} : vector<4x192xbf16>, vector<192x256xbf16>, vector<4x256xf32> -> vector<4x256xf32>
    %c0_5 = arith.constant 0 : index
    %c0_6 = arith.constant 0 : index
    %7 = vector.load %arg4[%c0_5, %c0_6] : memref<1x256xf32, #tpu.memory_space<vmem>>, vector<1x256xf32>
    %8 = vector.broadcast %7 : vector<1x256xf32> to vector<4x256xf32>
    %9 = arith.addf %6, %8 : vector<4x256xf32>
    %cst_7 = arith.constant 0.000000e+00 : f32
    %10 = vector.broadcast %cst_7 : f32 to vector<4x256xf32>
    %11 = arith.maximumf %9, %10 : vector<4x256xf32>
    %12 = arith.truncf %11 : vector<4x256xf32> to vector<4x256xbf16>
    %c0_8 = arith.constant 0 : index
    %c0_9 = arith.constant 0 : index
    %13 = vector.load %arg5[%c0_8, %c0_9] : memref<256x128xbf16, #tpu.memory_space<vmem>>, vector<256x128xbf16>
    %cst_10 = arith.constant dense<0.000000e+00> : vector<4x128xf32>
    %14 = tpu.matmul %12, %13, %cst_10 {dimension_numbers = #tpu.dot_dimension_numbers<[1], [0], [0], [1], [0, 0, 1, 1], [], []>} : vector<4x256xbf16>, vector<256x128xbf16>, vector<4x128xf32> -> vector<4x128xf32>
    %c0_11 = arith.constant 0 : index
    %c0_12 = arith.constant 0 : index
    %15 = vector.load %arg6[%c0_11, %c0_12] : memref<1x128xf32, #tpu.memory_space<vmem>>, vector<1x128xf32>
    %16 = vector.broadcast %15 : vector<1x128xf32> to vector<4x128xf32>
    %17 = arith.addf %14, %16 : vector<4x128xf32>
    %cst_13 = arith.constant 0.000000e+00 : f32
    %18 = vector.broadcast %cst_13 : f32 to vector<4x128xf32>
    %19 = arith.maximumf %17, %18 : vector<4x128xf32>
    %20 = arith.truncf %19 : vector<4x128xf32> to vector<4x128xbf16>
    %c0_14 = arith.constant 0 : index
    %c0_15 = arith.constant 0 : index
    %21 = vector.load %arg7[%c0_14, %c0_15] : memref<128x128xbf16, #tpu.memory_space<vmem>>, vector<128x128xbf16>
    %cst_16 = arith.constant dense<0.000000e+00> : vector<4x128xf32>
    %22 = tpu.matmul %20, %21, %cst_16 {dimension_numbers = #tpu.dot_dimension_numbers<[1], [0], [0], [1], [0, 0, 1, 1], [], []>} : vector<4x128xbf16>, vector<128x128xbf16>, vector<4x128xf32> -> vector<4x128xf32>
    %c0_17 = arith.constant 0 : index
    %c0_18 = arith.constant 0 : index
    %23 = vector.load %arg8[%c0_17, %c0_18] : memref<1x128xf32, #tpu.memory_space<vmem>>, vector<1x128xf32>
    %24 = vector.broadcast %23 : vector<1x128xf32> to vector<4x128xf32>
    %25 = arith.addf %22, %24 : vector<4x128xf32>
    %c0_19 = arith.constant 0 : index
    %c0_20 = arith.constant 0 : index
    %c0_21 = arith.constant 0 : index
    %26 = vector.load %arg9[%c0_19, %c0_20, %c0_21] : memref<1x1x128xf32, #tpu.memory_space<vmem>>, vector<1x1x128xf32>
    %27 = vector.shape_cast %26 : vector<1x1x128xf32> to vector<1x128xf32>
    %cst_22 = arith.constant dense<0.000000e+00> : vector<128xf32>
    %28 = vector.multi_reduction <add>, %25, %cst_22 [0] : vector<4x128xf32> to vector<128xf32>
    %29 = vector.shape_cast %28 : vector<128xf32> to vector<1x128xf32>
    %30 = arith.addf %27, %29 : vector<1x128xf32>
    %c0_23 = arith.constant 0 : index
    %c0_24 = arith.constant 0 : index
    %c0_25 = arith.constant 0 : index
    %31 = vector.load %arg9[%c0_23, %c0_24, %c0_25] : memref<1x1x128xf32, #tpu.memory_space<vmem>>, vector<1x1x128xf32>
    %32 = vector.shape_cast %31 : vector<1x1x128xf32> to vector<1x128xf32>
    %33 = vector.shape_cast %30 : vector<1x128xf32> to vector<1x1x128xf32>
    tpu.vector_store %arg9[%c0_23, %c0_24, %c0_25], %33 {strides = array<i32>} : memref<1x1x128xf32, #tpu.memory_space<vmem>>, vector<1x1x128xf32>,
    %c0_i32_26 = arith.constant 0 : i32
    %34 = arith.cmpi eq, %arg1, %c0_i32_26 : i32
    %35 = arith.extui %34 : i1 to i32
    %c0_i32_27 = arith.constant 0 : i32
    %36 = arith.cmpi ne, %35, %c0_i32_27 : i32
    scf.if %36 {
      %c0_28 = arith.constant 0 : index
      %c0_29 = arith.constant 0 : index
      %c0_30 = arith.constant 0 : index
      %37 = vector.load %arg9[%c0_28, %c0_29, %c0_30] : memref<1x1x128xf32, #tpu.memory_space<vmem>>, vector<1x1x128xf32>
      %38 = vector.shape_cast %37 : vector<1x1x128xf32> to vector<1x128xf32>
      %cst_31 = arith.constant 2.500000e-01 : f32
      %39 = vector.broadcast %cst_31 : f32 to vector<1x128xf32>
      %40 = arith.mulf %38, %39 : vector<1x128xf32>
      %c0_32 = arith.constant 0 : index
      %c0_33 = arith.constant 0 : index
      %c0_34 = arith.constant 0 : index
      %41 = vector.load %arg9[%c0_32, %c0_33, %c0_34] : memref<1x1x128xf32, #tpu.memory_space<vmem>>, vector<1x1x128xf32>
      %42 = vector.shape_cast %41 : vector<1x1x128xf32> to vector<1x128xf32>
      %43 = vector.shape_cast %40 : vector<1x128xf32> to vector<1x1x128xf32>
      tpu.vector_store %arg9[%c0_32, %c0_33, %c0_34], %43 {strides = array<i32>} : memref<1x1x128xf32, #tpu.memory_space<vmem>>, vector<1x1x128xf32>,
    } else {
    }
    return
  }
  func.func @transform_0(%arg0: i32, %arg1: i32) -> (i32, i32, i32) {
    %c0_i32 = arith.constant 0 : i32
    %c0_i32_0 = arith.constant 0 : i32
    return %arg0, %arg1, %c0_i32 : i32, i32, i32
  }
  func.func @transform_1(%arg0: i32, %arg1: i32) -> (i32, i32) {
    %c0_i32 = arith.constant 0 : i32
    %c0_i32_0 = arith.constant 0 : i32
    %c0_i32_1 = arith.constant 0 : i32
    return %c0_i32, %c0_i32_0 : i32, i32
  }
  func.func @transform_2(%arg0: i32, %arg1: i32) -> (i32, i32) {
    %c0_i32 = arith.constant 0 : i32
    %c0_i32_0 = arith.constant 0 : i32
    %c0_i32_1 = arith.constant 0 : i32
    return %c0_i32, %c0_i32_0 : i32, i32
  }
  func.func @transform_3(%arg0: i32, %arg1: i32) -> (i32, i32) {
    %c0_i32 = arith.constant 0 : i32
    %c0_i32_0 = arith.constant 0 : i32
    %c0_i32_1 = arith.constant 0 : i32
    return %c0_i32, %c0_i32_0 : i32, i32
  }
  func.func @transform_4(%arg0: i32, %arg1: i32) -> (i32, i32) {
    %c0_i32 = arith.constant 0 : i32
    %c0_i32_0 = arith.constant 0 : i32
    %c0_i32_1 = arith.constant 0 : i32
    return %c0_i32, %c0_i32_0 : i32, i32
  }
  func.func @transform_5(%arg0: i32, %arg1: i32) -> (i32, i32) {
    %c0_i32 = arith.constant 0 : i32
    %c0_i32_0 = arith.constant 0 : i32
    %c0_i32_1 = arith.constant 0 : i32
    return %c0_i32, %c0_i32_0 : i32, i32
  }
  func.func @transform_6(%arg0: i32, %arg1: i32) -> (i32, i32) {
    %c0_i32 = arith.constant 0 : i32
    %c0_i32_0 = arith.constant 0 : i32
    %c0_i32_1 = arith.constant 0 : i32
    return %c0_i32, %c0_i32_0 : i32, i32
  }
  func.func @transform_7(%arg0: i32, %arg1: i32) -> (i32, i32, i32) {
    %c0_i32 = arith.constant 0 : i32
    %c0_i32_0 = arith.constant 0 : i32
    %c0_i32_1 = arith.constant 0 : i32
    return %arg0, %c0_i32, %c0_i32_0 : i32, i32, i32
  }
}

</mosaic_0001>

<bundles_post_ra>
// kernel: opensim_model_forward.1
= control target key start
LH: loop header
LB: loop body
LE: loop exit
PB: predicated region body
PF: predicated region fallthrough
CT: control target
= control target key end

     0   :  { %s1188_s24 = smov 0   ;;  %s1190_s25 = smov 0   ;;  %s1456_s0 = inlined_call_operand.vmem [shape: bf16[2,4,192], index: 0, kind: input, shape index: {}]   ;;  %s1457_s1 = inlined_call_operand.vmem [shape: bf16[192,256], index: 1, kind: input, shape index: {}]   ;;  %s1458_s2 = inlined_call_operand.vmem [shape: f32[1,256], index: 2, kind: input, shape index: {}]   ;;  %s1459_s3 = inlined_call_operand.vmem [shape: bf16[256,128], index: 3, kind: input, shape index: {}]   ;;  %s1460_s4 = inlined_call_operand.vmem [shape: f32[1,128], index: 4, kind: input, shape index: {}]   ;;  %s1461_s5 = inlined_call_operand.vmem [shape: bf16[128,128], index: 5, kind: input, shape index: {}]   ;;  %s1462_s6 = inlined_call_operand.vmem [shape: f32[1,128], index: 6, kind: input, shape index: {}]   ;;  %s1463_s7 = inlined_call_operand.vmem [shape: f32[2,1,128], index: 7, kind: output, shape index: {}]  }
   0x1   :  { %s1192_s26 = smov 0  }
   0x2 LB: > { %s29_s27 = sadd.s32 1, %s1141_s25  ;;  %p848_p0 = scmp.ge.s32.totalorder %s1145_s26, 1  ;;  %s1145_s26 = sphi %s1192_s26, %s17_s26   ;;  %s1141_s25 = sphi %s1190_s25, %s1465_s25   ;;  %s1137_s24 = sphi %s1188_s24, %s1464_s24  }
   0x3   : > { %p31_p1 = scmp.ge.s32.totalorder %s29_s27, 2  ;;  %p255_p2 = scmp.lt.s32.totalorder %s1145_s26, 3 }
   0x5   : > { %s1467_s27 = smov (%p31_p1, %s29_s27), 0  ;;  %p256_p3 = pnand %p848_p0, %p255_p2 }
   0x6   : > { %p289_p4 = scmp.lt.s32.totalorder (!%p256_p3), %s1137_s24, 1 }
   0x7   : > { %259 = sbr.rel (%p256_p3) target bundleno = 478 (0x1de), region = 48 }
   0xc   : > { %v1062_v0 = vld [vmem:[%s1457_s1 + $0x74] sm:$0xf]  ;;  %v911_v1 = vld [vmem:[%s1457_s1 + $0x78] sm:$0xf0]  ;;  %v909_v2 = vld [vmem:[%s1457_s1 + $0x70] sm:$0xf] }
   0xd   : > { %v914_v3 = vor.u32 %v1062_v0, %v911_v1  ;;  %v1063_v4 = vld [vmem:[%s1457_s1 + $0x74] sm:$0xf0]  ;;  %v1060_v5 = vld [vmem:[%s1457_s1 + $0x64] sm:$0xf]  ;;  %v903_v6 = vld [vmem:[%s1457_s1 + $0x68] sm:$0xf0] }
   0xe   : > { %v910_v7 = vor.u32 %v1063_v4, %v909_v2  ;;  %v901_v8 = vld [vmem:[%s1457_s1 + $0x60] sm:$0xf]  ;;  %v1061_v9 = vld [vmem:[%s1457_s1 + $0x64] sm:$0xf0]  ;;  %v906_v10 = vor.u32 %v1060_v5, %v903_v6  ;;  %v1058_v11 = vld [vmem:[%s1457_s1 + $0x54] sm:$0xf] }
   0xf   : > { %492 = vmatpush.bf16.msra.mxu2 %v914_v3  ;;  %v902_v12 = vor.u32 %v1061_v9, %v901_v8  ;;  %v895_v13 = vld [vmem:[%s1457_s1 + $0x58] sm:$0xf0]  ;;  %v1070_v14 = vld [vmem:[%s1457_s1 + $0xb4] sm:$0xf]  ;;  %v893_v16 = vld [vmem:[%s1457_s1 + $0x50] sm:$0xf] }
  0x10   : > { %466 = vmatpush.bf16.msra.mxu0 %v910_v7  ;;  %v943_v15 = vld [vmem:[%s1457_s1 + $0xb8] sm:$0xf0]  ;;  %v1059_v17 = vld [vmem:[%s1457_s1 + $0x54] sm:$0xf0]  ;;  %v1068_v19 = vld [vmem:[%s1457_s1 + $0xa4] sm:$0xf]  ;;  %v898_v21 = vor.u32 %v1058_v11, %v895_v13 }
  0x11   : > { %v946_v18 = vor.u32 %v1070_v14, %v943_v15  ;;  %v935_v20 = vld [vmem:[%s1457_s1 + $0xa8] sm:$0xf0]  ;;  %v1056_v22 = vld [vmem:[%s1457_s1 + $0x44] sm:$0xf]  ;;  %v894_v25 = vor.u32 %v1059_v17, %v893_v16  ;;  %v1066_v26 = vld [vmem:[%s1457_s1 + $0x94] sm:$0xf] }
  0x12   : > { %v887_v23 = vld [vmem:[%s1457_s1 + $0x48] sm:$0xf0]  ;;  %v938_v24 = vor.u32 %v1068_v19, %v935_v20  ;;  %v927_v27 = vld [vmem:[%s1457_s1 + $0x98] sm:$0xf0]  ;;  %v941_v28 = vld [vmem:[%s1457_s1 + $0xb0] sm:$0xf] }
  0x13   : > { %493 = vmatpush.bf16.msra.mxu2 %v906_v10  ;;  %509 = vmatpush.bf16.msra.mxu3 %v946_v18  ;;  %v885_v29 = vld [vmem:[%s1457_s1 + $0x40] sm:$0xf]  ;;  %v1057_v30 = vld [vmem:[%s1457_s1 + $0x44] sm:$0xf0]  ;;  %v1071_v31 = vld [vmem:[%s1457_s1 + $0xb4] sm:$0xf0]  ;;  %v890_v34 = vor.u32 %v1056_v22, %v887_v23  ;;  %v930_v36 = vor.u32 %v1066_v26, %v927_v27 }
  0x14   : > { %467 = vmatpush.bf16.msra.mxu0 %v902_v12  ;;  %v1054_v32 = vld [vmem:[%s1457_s1 + $0x34] sm:$0xf]  ;;  %v942_v33 = vor.u32 %v1071_v31, %v941_v28  ;;  %v879_v35 = vld [vmem:[%s1457_s1 + $0x38] sm:$0xf0]  ;;  %v933_v37 = vld [vmem:[%s1457_s1 + $0xa0] sm:$0xf]  ;;  %v886_v39 = vor.u32 %v1057_v30, %v885_v29 }
  0x15   : > { %v1069_v38 = vld [vmem:[%s1457_s1 + $0xa4] sm:$0xf0]  ;;  %v1064_v40 = vld [vmem:[%s1457_s1 + $0x84] sm:$0xf]  ;;  %v919_v41 = vld [vmem:[%s1457_s1 + $0x88] sm:$0xf0]  ;;  %v882_v47 = vor.u32 %v1054_v32, %v879_v35 }
  0x16   : > { %483 = vmatpush.bf16.msra.mxu1 %v942_v33  ;;  %v934_v42 = vor.u32 %v1069_v38, %v933_v37  ;;  %v877_v43 = vld [vmem:[%s1457_s1 + $0x30] sm:$0xf]  ;;  %v1055_v44 = vld [vmem:[%s1457_s1 + $0x34] sm:$0xf0]  ;;  %s1469_s24 = smov (!%p289_p4, %s1137_s24), 1  ;;  %v922_v50 = vor.u32 %v1064_v40, %v919_v41  ;;  %vm463_vm0 = vcmask 523264  }
  0x17   : > { %494 = vmatpush.bf16.msra.mxu2 %v898_v21  ;;  %510 = vmatpush.bf16.msra.mxu3 %v938_v24  ;;  %v925_v45 = vld [vmem:[%s1457_s1 + $0x90] sm:$0xf]  ;;  %v1067_v46 = vld [vmem:[%s1457_s1 + $0x94] sm:$0xf0]  ;;  %v1052_v48 = vld [vmem:[%s1457_s1 + $0x24] sm:$0xf]  ;;  %v878_v51 = vor.u32 %v1055_v44, %v877_v43 }
  0x18   : > { %468 = vmatpush.bf16.msra.mxu0 %v894_v25  ;;  %v871_v49 = vld [vmem:[%s1457_s1 + $0x28] sm:$0xf0]  ;;  %v869_v52 = vld [vmem:[%s1457_s1 + $0x20] sm:$0xf]  ;;  %v1053_v53 = vld [vmem:[%s1457_s1 + $0x24] sm:$0xf0]  ;;  %v926_v54 = vor.u32 %v1067_v46, %v925_v45 }
  0x19   : > { %s1047_s28 = sshll.u32 %s1469_s24, 2  ;;  %v917_v55 = vld [vmem:[%s1457_s1 + $0x80] sm:$0xf]  ;;  %v1065_v56 = vld [vmem:[%s1457_s1 + $0x84] sm:$0xf0]  ;;  %v1087_v57 = vld [vmem:[%s1459_s3 + $0x78] sm:$0xff]  ;;  %v874_v59 = vor.u32 %v1052_v48, %v871_v49  ;;  %v870_v61 = vor.u32 %v1053_v53, %v869_v52 }
  0x1a   : > { %484 = vmatpush.bf16.msra.mxu1 %v934_v42  ;;  %s297_s8 = scalar_lea.vmem %s1456_s0, %s1047_s28  ;;  %v1050_v60 = vld [vmem:[%s1457_s1 + $0x14] sm:$0xf]  ;;  %v863_v62 = vld [vmem:[%s1457_s1 + $0x18] sm:$0xf0]  ;;  %v861_v63 = vld [vmem:[%s1457_s1 + $0x10] sm:$0xf]  ;;  %v918_v0 = vor.u32 %v1065_v56, %v917_v55  ;;  %s300_s28 = scalar_lea.vmem %s1463_s7, %s1469_s24 }
  0x1b   : > { %495 = vmatpush.bf16.msra.mxu2 %v890_v34  ;;  %511 = vmatpush.bf16.msra.mxu3 %v930_v36  ;;  %v307_v58 = vld [vmem:[%s297_s8] sm:$0xf]  ;;  %v1051_v1 = vld [vmem:[%s1457_s1 + $0x14] sm:$0xf0]  ;;  %v1086_v3 = vld [vmem:[%s1459_s3 + $0x70] sm:$0xff]  ;;  %v866_v4 = vor.u32 %v1050_v60, %v863_v62  ;;  %vm764_vm1 = vcmask 1043456  }
  0x1c   : > { %469 = vmatpush.bf16.msra.mxu0 %v886_v39  ;;  %339 = vst [vmem:[#allocation1] ss:$4 sm:$0xff] %v307_v58  ;;  %v1079_v2 = vld [vmem:[%s1459_s3 + $0x38] sm:$0xff]  ;;  %v862_v5 = vor.u32 %v1051_v1, %v861_v63  ;;  %v1048_v6 = vld [vmem:[%s1457_s1 + $0x4] sm:$0xf]  ;;  %v1078_v10 = vld [vmem:[%s1459_s3 + $0x30] sm:$0xff] }
  0x1d   : > { %v855_v7 = vld [vmem:[%s1457_s1 + $0x8] sm:$0xf0]  ;;  %v853_v8 = vld [vmem:[%s1457_s1] sm:$0xf]  ;;  %v1049_v9 = vld [vmem:[%s1457_s1 + $0x4] sm:$0xf0] }
  0x1e   : > { %485 = vmatpush.bf16.msra.mxu1 %v926_v54  ;;  %v1085_v11 = vld [vmem:[%s1459_s3 + $0x68] sm:$0xff]  ;;  %v858_v13 = vor.u32 %v1048_v6, %v855_v7  ;;  %v854_v14 = vor.u32 %v1049_v9, %v853_v8  ;;  %v1084_v16 = vld [vmem:[%s1459_s3 + $0x60] sm:$0xff]  ;;  %v1075_v19 = vld [vmem:[%s1459_s3 + $0x18] sm:$0xff]  ;;  %v1147_v54 = vmov 0.0  }
  0x1f   : > { %496 = vmatpush.bf16.msra.mxu2 %v882_v47  ;;  %512 = vmatpush.bf16.msra.mxu3 %v922_v50  ;;  %v1077_v15 = vld [vmem:[%s1459_s3 + $0x28] sm:$0xff]  ;;  %v1076_v18 = vld [vmem:[%s1459_s3 + $0x20] sm:$0xff]  ;;  %v1074_v20 = vld [vmem:[%s1459_s3 + $0x10] sm:$0xff]  ;;  %306 = vst [vmem:[%s300_s28] sm:$0x1] %v1147_v54 }
  0x20   : > { %470 = vmatpush.bf16.msra.mxu0 %v878_v51  ;;  %v1083_v21 = vld [vmem:[%s1459_s3 + $0x58] sm:$0xff]  ;;  %v1073_v22 = vld [vmem:[%s1459_s3 + $0x8] sm:$0xff]  ;;  %v1082_v23 = vld [vmem:[%s1459_s3 + $0x50] sm:$0xff] }
  0x21   : > { %v1072_v24 = vld [vmem:[%s1459_s3] sm:$0xff]  ;;  %v1081_v25 = vld [vmem:[%s1459_s3 + $0x48] sm:$0xff]  ;;  %v1095_v27 = vld [vmem:[%s1461_s5 + $0x38] sm:$0xff] }
  0x22   : > { %486 = vmatpush.bf16.msra.mxu1 %v918_v0  ;;  %v1080_v26 = vld [vmem:[%s1459_s3 + $0x40] sm:$0xff]  ;;  %v1094_v28 = vld [vmem:[%s1461_s5 + $0x30] sm:$0xff]  ;;  %v1093_v29 = vld [vmem:[%s1461_s5 + $0x28] sm:$0xff] }
  0x23   : > { %667 = vmatpush.bf16.msrb.mxu3 %v1087_v57  ;;  %497 = vmatpush.bf16.msra.mxu2 %v874_v59  ;;  %v341_v12 = vld.sshfl [vmem:[#allocation1 + $0x8] sm:$0xff pattern:$0x73625140]  ;;  %v340_v17 = vld.sshfl [vmem:[#allocation1] sm:$0xff pattern:$0x73625140] }
  0x24   : > { %471 = vmatpush.bf16.msra.mxu0 %v870_v61  ;;  %948 = vmatmul.msk.bf16.vlgmr.msra.gmra.mxu3 %vm463_vm0, %v341_v12  ;;  %v1092_v30 = vld [vmem:[%s1461_s5 + $0x20] sm:$0xff]  ;;  %v1091_v50 = vld [vmem:[%s1461_s5 + $0x18] sm:$0xff]  ;;  %v1090_v51 = vld [vmem:[%s1461_s5 + $0x10] sm:$0xff] }
  0x25   : > { %947 = vmatmul.msk.bf16.vlgmr.msra.gmra.mxu1 %vm463_vm0, %v341_v12  ;;  %v332_v32 = vld [vmem:[%s1458_s2] sm:$0x3]  ;;  %v1089_v52 = vld [vmem:[%s1461_s5 + $0x8] sm:$0xff] }
  0x26   : > { %654 = vmatpush.bf16.msrb.mxu1 %v1079_v2  ;;  %v334_v33 = vperm.slane %v332_v32, 0  ;;  %v335_v38 = vperm.slane %v332_v32, 1  ;;  %v1088_v53 = vld [vmem:[%s1461_s5] sm:$0xff] }
  0x27   : > { %668 = vmatpush.bf16.msrb.mxu3 %v1086_v3  ;;  %498 = vmatpush.bf16.msra.mxu2 %v866_v4  ;;  %v1121_v56 = vld [vmem:[%s1460_s4] ss:$0 sm:$0xff] }
  0x28   : > { %472 = vmatpush.bf16.msra.mxu0 %v862_v5  ;;  %v1122_v0 = vld [vmem:[%s1462_s6] ss:$0 sm:$0xff] }
  0x2a   : > { %655 = vmatpush.bf16.msrb.mxu1 %v1078_v10  ;;  %v763_v10 = vld [vmem:[%s300_s28] sm:$0x1] }
  0x2b   : > { %669 = vmatpush.bf16.msrb.mxu3 %v1085_v11  ;;  %499 = vmatpush.bf16.msra.mxu2 %v858_v13 }
  0x2c   : > { %473 = vmatpush.bf16.msra.mxu0 %v854_v14 }
  0x2e   : > { %656 = vmatpush.bf16.msrb.mxu1 %v1077_v15  ;;  %500 = vmatmul.bf16.vlgmr.msra.gmra.mxu2 %v340_v17 }
  0x2f   : > { %670 = vmatpush.bf16.msrb.mxu3 %v1084_v16  ;;  %474 = vmatmul.bf16.vlgmr.msra.gmra.mxu0 %v340_v17 }
  0x30   : > { %750 = vmatpush.bf16.msrb.mxu0 %v1095_v27 }
  0x32   : > { %657 = vmatpush.bf16.msrb.mxu1 %v1076_v18 }
  0x33   : > { %671 = vmatpush.bf16.msrb.mxu3 %v1083_v21 }
  0x34   : > { %751 = vmatpush.bf16.msrb.mxu0 %v1094_v28 }
  0x36   : > { %658 = vmatpush.bf16.msrb.mxu1 %v1075_v19 }
  0x37   : > { %672 = vmatpush.bf16.msrb.mxu3 %v1082_v23 }
  0x38   : > { %752 = vmatpush.bf16.msrb.mxu0 %v1093_v29 }
  0x3a   : > { %659 = vmatpush.bf16.msrb.mxu1 %v1074_v20 }
  0x3b   : > { %673 = vmatpush.bf16.msrb.mxu3 %v1081_v25 }
  0x3c   : > { %753 = vmatpush.bf16.msrb.mxu0 %v1092_v30 }
  0x3e   : > { %660 = vmatpush.bf16.msrb.mxu1 %v1073_v22 }
  0x3f   : > { %674 = vmatpush.bf16.msrb.mxu3 %v1080_v26 }
  0x40   : > { %754 = vmatpush.bf16.msrb.mxu0 %v1091_v50 }
  0x42   : > { %661 = vmatpush.bf16.msrb.mxu1 %v1072_v24 }
  0x44   : > { %755 = vmatpush.bf16.msrb.mxu0 %v1090_v51 }
  0x48   : > { %756 = vmatpush.bf16.msrb.mxu0 %v1089_v52 }
  0x4c   : > { %757 = vmatpush.bf16.msrb.mxu0 %v1088_v53 }
  0xa2   : > { %v488_v31 = vpop.f32.mrf.mxu1 }
  0xa7   : > { %v514_v34 = vpop.f32.mrf.mxu3 }
  0xaa   : > { %v490_v37 = vpop.f32.mrf.mxu1 }
  0xac   : > { %v475_v35 = vpop.f32.mrf.mxu0 }
  0xad   : > { %v476_v36 = vadd.f32 %v475_v35, %v334_v33 }
  0xaf   : > { %v489_v39 = vadd.f32 %v488_v31, %v476_v36  ;;  %v516_v43 = vpop.f32.mrf.mxu3 }
  0xb1   : > { %v518_v40 = vmax.f32 %v489_v39, 0.0  ;;  %v501_v41 = vpop.f32.mrf.mxu2 }
  0xb2   : > { %v502_v42 = vadd.f32 %v501_v41, %v335_v38 }
  0xb3   : > { %v520_v44 = vpack.c.bf16 %v518_v40, %v518_v40 }
  0xb4   : > { %v515_v45 = vadd.f32 %v514_v34, %v502_v42  ;;  %v477_v46 = vpop.f32.mrf.mxu0 }
  0xb5   : > { %662 = vmatmul.bf16.vlgmr.msrb.gmra.mxu1 %v520_v44 }
  0xb6   : > { %v519_v47 = vmax.f32 %v515_v45, 0.0 }
  0xb8   : > { %v521_v48 = vpack.c.bf16 %v519_v47, %v519_v47 }
  0xb9   : > { %v503_v49 = vpop.f32.mrf.mxu2 }
  0xba   : > { %675 = vmatmul.bf16.vlgmr.msrb.gmra.mxu3 %v521_v48 }
 0x132   : > { %v663_v55 = vpop.f32.mrf.mxu1 }
 0x133   : > { %v664_v57 = vadd.f32 %v1121_v56, %v663_v55 }
 0x13a   : > { %v665_v58 = vpop.f32.mrf.mxu1 }
 0x13d   : > { %v676_v59 = vpop.f32.mrf.mxu3 }
 0x13e   : > { %v677_v60 = vadd.f32 %v676_v59, %v664_v57 }
 0x140   : > { %v680_v61 = vmax.f32 %v677_v60, 0.0 }
 0x142   : > { %v681_v62 = vpack.c.bf16 %v680_v61, %v680_v61 }
 0x144   : > { %758 = vmatmul.bf16.vlgmr.msrb.gmra.mxu0 %v681_v62 }
 0x145   : > { %v678_v63 = vpop.f32.mrf.mxu3 }
 0x1c1   : > { %v759_v1 = vpop.f32.mrf.mxu0 }
 0x1c2   : > { %v760_v2 = vadd.f32 %v1122_v0, %v759_v1 }
 0x1c4   : > { %v765_v3 = vsel %vm764_vm1, %v760_v2, 0.0 }
 0x1c5   : > { %v766_v4 = vrot.slane %v765_v3, 4 }
 0x1c7   : > { %v767_v5 = vadd.f32 %v766_v4, %v765_v3 }
 0x1c9   : > { %v768_v6 = vrot.slane %v767_v5, 2  ;;  %v761_v7 = vpop.f32.mrf.mxu0 }
 0x1cb   : > { %v769_v8 = vadd.f32 %v768_v6, %v767_v5 }
 0x1cd   : > { %v770_v9 = vrot.slane %v769_v8, 1 }
 0x1cf   : > { %v771_v11 = vadd.f32 %v770_v9, %v769_v8 }
 0x1d1   : > { %v772_v12 = vadd.f32 %v771_v11, %v763_v10 }
 0x1d3   : > { %773 = vst [vmem:[%s300_s28] sm:$0x1] %v772_v12 }
 0x1da   : > { %v777_v13 = vld [vmem:[%s300_s28] sm:$0x1] }
 0x1db   : > { %v778_v14 = vmul.f32 0.25, %v777_v13 }
 0x1dd   : > { %779 = vst [vmem:[%s300_s28] sm:$0x1] %v778_v14 }
 0x1de PF: > { %s17_s26 = sadd.s32 1, %s1145_s26   ;;  %s1464_s24 = smov %s1141_s25 }
 0x1df   : > { %p14_p5 = scmp.ge.s32.totalorder %s17_s26, 4   ;;  %s1465_s25 = smov %s1467_s27 }
 0x1e1   :  { %16 = sbr.rel (!%p14_p5) target bundleno = 2 (0x2), region = 86 }

</bundles_post_ra>
